<compile_context>
chip_gen: v7x
topology: tpu7x:2x2x1
jax: 0.10.0
libtpu: 0.0.40
codegen_flags: <defaults>
</compile_context>

<pallas_src>
import functools

import jax
import jax.numpy as jnp
from jax import lax
from jax.experimental import pallas as pl
from jax.experimental.pallas import tpu as pltpu

_TARGET_BLOCK_BYTES = 4 * 1024 * 1024   # ~4 MiB/block; in+out double-buffered ~16 MiB


def _round_up(v, m):
    return ((v + m - 1) // m) * m


def _gaussian_noise_kernel(seed_ref, x_ref, o_ref, *, mean, stddev, lanes, tile_rows):
    shape = x_ref.shape                                   # (tile_rows, lanes), static
    # Global flat element index (int32; wraps mod 2**32 past ~4G elements, which
    # only affects noise-stream uniqueness, never correctness).
    row0 = pl.program_id(0) * tile_rows
    r = lax.broadcasted_iota(jnp.int32, shape, 0)
    c = lax.broadcasted_iota(jnp.int32, shape, 1)
    idx = (row0 + r) * lanes + c

    # Stateless counter RNG: golden-ratio seed fold + murmur3 fmix32.
    # (seed*PHI offsets the counter space by a near-random 32-bit amount, so
    #  consecutive seeds never reuse each other's noise for realistic sizes.)
    # Arithmetic-shift-then-mask == logical shift, keeping everything in int32.
    h = idx + seed_ref[0] * (-1640531527)                 # 0x9E3779B9
    h = h ^ ((h >> 16) & 0xFFFF)
    h = h * (-2048144789)                                 # 0x85EBCA6B
    h = h ^ ((h >> 13) & 0x7FFFF)
    h = h * (-1028477341)                                 # 0xC2B2AE35
    h = h ^ ((h >> 16) & 0xFFFF)

    # Two 16-bit uniforms in (0,1) from one 32-bit hash, then Box-Muller.
    u1 = (((h >> 16) & 0xFFFF).astype(jnp.float32) + 0.5) * (1.0 / 65536.0)
    u2 = ((h & 0xFFFF).astype(jnp.float32) + 0.5) * (1.0 / 65536.0)
    rad = jnp.sqrt(-2.0 * jnp.log(u1))                    # finite: u1 >= 2**-17
    z = rad * jnp.cos(6.283185307179586 * u2)             # ~N(0, 1)

    noise = (jnp.float32(stddev) * z + jnp.float32(mean)).astype(o_ref.dtype)
    o_ref[...] = x_ref[...] + noise                       # add in the input dtype


def gaussian_noise(x, *, stddev, mean=0.0, seed=0, training=True):
    """Forward pass of GaussianNoise.

    training=True  -> x + N(mean, stddev) noise, same shape/dtype.
    training=False -> x unchanged (matches the PyTorch module).
    """
    if not training:
        return x
    n = x.size
    if n == 0:
        return x
    orig_shape = x.shape

    # Zero-copy 2-D view (no pad, no tail slice).
    lanes = None
    for cand in (512, 256, 128):            # lane-dense when the size allows it
        if n % cand == 0:
            lanes = cand
            break
    if lanes is None:                       # ragged total size: trailing dim is the
        lanes = orig_shape[-1] if x.ndim >= 1 else 1   # lane axis (full-extent block dim)
    rows = n // lanes
    x2 = x.reshape(rows, lanes)

    # Row tiling: ~4 MiB blocks, multiple of 16 rows; keep grid >= 2 for
    # medium/large inputs so v7x's two TensorCores both get work.
    itemsize = x.dtype.itemsize
    target_rows = max(16, (_TARGET_BLOCK_BYTES // (lanes * itemsize)) // 16 * 16)
    half_rows = _round_up(-(-rows // 2), 16)
    tile_rows = min(target_rows, half_rows)
    if tile_rows >= rows:
        tile_rows = rows                    # single full-extent block (tiny inputs)
    grid = (pl.cdiv(rows, tile_rows),)      # last block may be partial -> masked

    seed_arr = jnp.asarray([seed], dtype=jnp.int32)
    kernel = functools.partial(
        _gaussian_noise_kernel, mean=float(mean), stddev=float(stddev),
        lanes=lanes, tile_rows=tile_rows)

    out = pl.pallas_call(
        kernel,
        out_shape=jax.ShapeDtypeStruct((rows, lanes), x.dtype),
        grid_spec=pltpu.PrefetchScalarGridSpec(
            num_scalar_prefetch=1,
            grid=grid,
            in_specs=[pl.BlockSpec((tile_rows, lanes), lambda i, s_ref: (i, 0))],
            out_specs=pl.BlockSpec((tile_rows, lanes), lambda i, s_ref: (i, 0)),
        ),
        compiler_params=pltpu.CompilerParams(
            dimension_semantics=("parallel",),     # v7x: shard grid across both TCs
            vmem_limit_bytes=32 * 1024 * 1024,     # v5e scoped default is 16 MiB
        ),
    )(seed_arr, x2)

    return out.reshape(orig_shape)


if __name__ == "__main__":
    stddev, mean = 0.2, 0.0
    key = jax.random.PRNGKey(0)
    k1, k2, k3, k4 = jax.random.split(key, 4)

    # 1) small shape consistent with the layer's usage: (batch, seq, hidden)
    x = jax.random.normal(k1, (2, 8, 32), dtype=jnp.float32)
    y = jax.block_until_ready(gaussian_noise(x, stddev=stddev, mean=mean, seed=0))
    assert y.shape == x.shape and y.dtype == x.dtype
    assert bool(jnp.all(jnp.isfinite(y)))
    r = y - x
    assert float(jnp.abs(jnp.mean(r))) < 0.06
    assert 0.15 < float(jnp.std(r)) < 0.25

    # 2) larger input: lane-dense zero-copy path, grid == 2, "parallel" axis
    xb = jax.random.normal(k2, (4, 256, 384), dtype=jnp.float32)
    yb = jax.block_until_ready(gaussian_noise(xb, stddev=stddev, mean=mean, seed=7))
    rb = yb - xb
    assert yb.shape == xb.shape and bool(jnp.all(jnp.isfinite(yb)))
    assert float(jnp.abs(jnp.mean(rb))) < 0.01
    assert 0.19 < float(jnp.std(rb)) < 0.21
    # deterministic for a fixed seed, different for a different seed
    yb2 = jax.block_until_ready(gaussian_noise(xb, stddev=stddev, mean=mean, seed=7))
    assert bool(jnp.all(yb2 == yb))
    yb8 = jax.block_until_ready(gaussian_noise(xb, stddev=stddev, mean=mean, seed=8))
    assert float(jnp.mean(jnp.abs(yb8 - yb))) > 0.05
    # different regions of the tensor must not carry identical noise
    assert float(jnp.std(rb[:2] - rb[2:])) > 0.1

    # 3) ragged size: non-128 trailing dim, partial boundary block (rows=21, tile=16)
    xr = jax.random.normal(k3, (3, 7, 100), dtype=jnp.float32)
    yr = jax.block_until_ready(gaussian_noise(xr, stddev=stddev, mean=mean, seed=3))
    assert yr.shape == xr.shape and bool(jnp.all(jnp.isfinite(yr)))
    rr = yr - xr
    assert float(jnp.abs(jnp.mean(rr))) < 0.05
    assert 0.16 < float(jnp.std(rr)) < 0.24

    # 4) bf16 input: noise drawn and added in the input dtype
    xh = jax.random.normal(k4, (4, 128, 256), dtype=jnp.bfloat16)
    yh = jax.block_until_ready(gaussian_noise(xh, stddev=stddev, mean=mean, seed=5))
    assert yh.dtype == jnp.bfloat16 and yh.shape == xh.shape
    rh = yh.astype(jnp.float32) - xh.astype(jnp.float32)
    assert 0.17 < float(jnp.std(rh)) < 0.23

    # eval mode: identity
    y_eval = jax.block_until_ready(
        gaussian_noise(x, stddev=stddev, mean=mean, training=False))
    assert bool(jnp.all(y_eval == x))

    print("KERNEL_OK")
</pallas_src>

<mosaic_0001>
module attributes {stable_mosaic.version = 11 : i64} {
  func.func @_gaussian_noise_kernel(%arg0: i32, %arg1: memref<1xi32, #tpu.memory_space<smem>>, %arg2: memref<1x512xf32, #tpu.memory_space<vmem>>, %arg3: memref<1x512xf32, #tpu.memory_space<vmem>>) attributes {dimension_semantics = [#tpu.dimension_semantics<parallel>], iteration_bounds = array<i64: 1>, scalar_prefetch = 1 : i64, scratch_operands = 0 : i64, tpu.core_type = #tpu.core_type<tc>, window_params = [{transform_indices = @transform_0, window_bounds = array<i64: 1, 512>}, {transform_indices = @transform_1, window_bounds = array<i64: 1, 512>}]} {
    %c1_i32 = arith.constant 1 : i32
    %0 = arith.muli %arg0, %c1_i32 : i32
    %1 = tpu.iota {dimensions = array<i32: 0>} : vector<1x512xi32>
    %2 = tpu.iota {dimensions = array<i32: 1>} : vector<1x512xi32>
    %3 = vector.broadcast %0 : i32 to vector<1x512xi32>
    %4 = arith.addi %3, %1 : vector<1x512xi32>
    %c512_i32 = arith.constant 512 : i32
    %5 = vector.broadcast %c512_i32 : i32 to vector<1x512xi32>
    %6 = arith.muli %4, %5 : vector<1x512xi32>
    %7 = arith.addi %6, %2 : vector<1x512xi32>
    %c0 = arith.constant 0 : index
    %8 = memref.load %arg1[%c0] : memref<1xi32, #tpu.memory_space<smem>>
    %c-1640531527_i32 = arith.constant -1640531527 : i32
    %9 = arith.muli %8, %c-1640531527_i32 : i32
    %10 = vector.broadcast %9 : i32 to vector<1x512xi32>
    %11 = arith.addi %7, %10 : vector<1x512xi32>
    %c16_i32 = arith.constant 16 : i32
    %12 = vector.broadcast %c16_i32 : i32 to vector<1x512xi32>
    %13 = arith.shrsi %11, %12 : vector<1x512xi32>
    %c65535_i32 = arith.constant 65535 : i32
    %14 = vector.broadcast %c65535_i32 : i32 to vector<1x512xi32>
    %15 = arith.andi %13, %14 : vector<1x512xi32>
    %16 = arith.xori %11, %15 : vector<1x512xi32>
    %c-2048144789_i32 = arith.constant -2048144789 : i32
    %17 = vector.broadcast %c-2048144789_i32 : i32 to vector<1x512xi32>
    %18 = arith.muli %16, %17 : vector<1x512xi32>
    %c13_i32 = arith.constant 13 : i32
    %19 = vector.broadcast %c13_i32 : i32 to vector<1x512xi32>
    %20 = arith.shrsi %18, %19 : vector<1x512xi32>
    %c524287_i32 = arith.constant 524287 : i32
    %21 = vector.broadcast %c524287_i32 : i32 to vector<1x512xi32>
    %22 = arith.andi %20, %21 : vector<1x512xi32>
    %23 = arith.xori %18, %22 : vector<1x512xi32>
    %c-1028477341_i32 = arith.constant -1028477341 : i32
    %24 = vector.broadcast %c-1028477341_i32 : i32 to vector<1x512xi32>
    %25 = arith.muli %23, %24 : vector<1x512xi32>
    %c16_i32_0 = arith.constant 16 : i32
    %26 = vector.broadcast %c16_i32_0 : i32 to vector<1x512xi32>
    %27 = arith.shrsi %25, %26 : vector<1x512xi32>
    %c65535_i32_1 = arith.constant 65535 : i32
    %28 = vector.broadcast %c65535_i32_1 : i32 to vector<1x512xi32>
    %29 = arith.andi %27, %28 : vector<1x512xi32>
    %30 = arith.xori %25, %29 : vector<1x512xi32>
    %c16_i32_2 = arith.constant 16 : i32
    %31 = vector.broadcast %c16_i32_2 : i32 to vector<1x512xi32>
    %32 = arith.shrsi %30, %31 : vector<1x512xi32>
    %c65535_i32_3 = arith.constant 65535 : i32
    %33 = vector.broadcast %c65535_i32_3 : i32 to vector<1x512xi32>
    %34 = arith.andi %32, %33 : vector<1x512xi32>
    %35 = arith.sitofp %34 : vector<1x512xi32> to vector<1x512xf32>
    %cst = arith.constant 5.000000e-01 : f32
    %36 = vector.broadcast %cst : f32 to vector<1x512xf32>
    %37 = arith.addf %35, %36 : vector<1x512xf32>
    %cst_4 = arith.constant 1.52587891E-5 : f32
    %38 = vector.broadcast %cst_4 : f32 to vector<1x512xf32>
    %39 = arith.mulf %37, %38 : vector<1x512xf32>
    %c65535_i32_5 = arith.constant 65535 : i32
    %40 = vector.broadcast %c65535_i32_5 : i32 to vector<1x512xi32>
    %41 = arith.andi %30, %40 : vector<1x512xi32>
    %42 = arith.sitofp %41 : vector<1x512xi32> to vector<1x512xf32>
    %cst_6 = arith.constant 5.000000e-01 : f32
    %43 = vector.broadcast %cst_6 : f32 to vector<1x512xf32>
    %44 = arith.addf %42, %43 : vector<1x512xf32>
    %cst_7 = arith.constant 1.52587891E-5 : f32
    %45 = vector.broadcast %cst_7 : f32 to vector<1x512xf32>
    %46 = arith.mulf %44, %45 : vector<1x512xf32>
    %47 = math.log %39 : vector<1x512xf32>
    %cst_8 = arith.constant -2.000000e+00 : f32
    %48 = vector.broadcast %cst_8 : f32 to vector<1x512xf32>
    %49 = arith.mulf %48, %47 : vector<1x512xf32>
    %50 = math.sqrt %49 : vector<1x512xf32>
    %cst_9 = arith.constant 6.28318548 : f32
    %51 = vector.broadcast %cst_9 : f32 to vector<1x512xf32>
    %52 = arith.mulf %51, %46 : vector<1x512xf32>
    %53 = math.cos %52 : vector<1x512xf32>
    %54 = arith.mulf %50, %53 : vector<1x512xf32>
    %cst_10 = arith.constant 2.000000e-01 : f32
    %55 = vector.broadcast %cst_10 : f32 to vector<1x512xf32>
    %56 = arith.mulf %55, %54 : vector<1x512xf32>
    %cst_11 = arith.constant 0.000000e+00 : f32
    %57 = vector.broadcast %cst_11 : f32 to vector<1x512xf32>
    %58 = arith.addf %56, %57 : vector<1x512xf32>
    %c0_12 = arith.constant 0 : index
    %c0_13 = arith.constant 0 : index
    %59 = vector.load %arg2[%c0_12, %c0_13] : memref<1x512xf32, #tpu.memory_space<vmem>>, vector<1x512xf32>
    %60 = arith.addf %59, %58 : vector<1x512xf32>
    %c0_14 = arith.constant 0 : index
    %c0_15 = arith.constant 0 : index
    %61 = vector.load %arg3[%c0_14, %c0_15] : memref<1x512xf32, #tpu.memory_space<vmem>>, vector<1x512xf32>
    tpu.vector_store %arg3[%c0_14, %c0_15], %60 {strides = array<i32>} : memref<1x512xf32, #tpu.memory_space<vmem>>, vector<1x512xf32>,
    return
  }
  func.func @transform_0(%arg0: i32, %arg1: memref<1xi32, #tpu.memory_space<smem>>) -> (i32, i32) {
    %c0_i32 = arith.constant 0 : i32
    %c0_i32_0 = arith.constant 0 : i32
    return %arg0, %c0_i32 : i32, i32
  }
  func.func @transform_1(%arg0: i32, %arg1: memref<1xi32, #tpu.memory_space<smem>>) -> (i32, i32) {
    %c0_i32 = arith.constant 0 : i32
    %c0_i32_0 = arith.constant 0 : i32
    return %arg0, %c0_i32 : i32, i32
  }
}

</mosaic_0001>

<bundles_post_ra>
// kernel: tpu_custom_call.1
= control target key start
LH: loop header
LB: loop body
LE: loop exit
PB: predicated region body
PF: predicated region fallthrough
CT: control target
= control target key end

     0   :  { %8 = vsyncpa [#allocation5], 0  ;;  %s1182_s0 = inlined_call_operand.<no memory space> [shape: s32[1], index: 0, kind: input, shape index: {}]   ;;  %s1183_s1 = inlined_call_operand.hbm [shape: f32[1,512], index: 1, kind: input, shape index: {}]   ;;  %s1184_s2 = inlined_call_operand.hbm [shape: f32[1,512], index: 2, kind: output, shape index: {}]  }
   0x1   :  { %9 = vsyncpa [#allocation6], 0  ;;  %s780_s9 = smov [#allocation4]   ;;  %s732_s13 = scalar_lea.hbm %s1183_s1, 64 }
   0x2   :  { %s16_s10 = sshll.u32 %s780_s9, 4  ;;  %p733_p0 = scmp.ne.s32.totalorder %s1183_s1, %s732_s13  ;;  %s17_s10 = int_to_ptr.vmem [resolvable:$true] %s16_s10 }
   0x3   :  { %p736_p1 = scmp.lt.u32.totalorder %s732_s13, %s1183_s1 }
   0x5   :  { %p738_p2 = pnand %p736_p1, %p733_p0 }
   0x7   :  { %741 = shalt.err (!%p738_p2)
}
   0x8   :  { %s742_s18 = scalar_lea.vmem %s17_s10, 64  ;;  %p747_p4 = scmp.lt.s32.totalorder %s17_s10, %s17_s10 }
   0x9   :  { %p743_p3 = scmp.ne.s32.totalorder %s17_s10, %s742_s18  ;;  %p748_p5 = scmp.lt.s32.totalorder %s742_s18, %s742_s18 }
   0xb   :  { %p749_p6 = por %p748_p5, %p747_p4 }
   0xd   :  { %p750_p7 = pnand %p749_p6, %p743_p3 }
   0xf   :  { %753 = shalt.err (!%p750_p7)
}
  0x10   :  { %19 = dma.hbm_to_vmem [thread:$0]  %s1183_s1, 64, %s17_s10, [#allocation5]  }
  0x11   :  { %776 = dma.done.wait [#allocation5], 64  }
  0x12   :  { %777 = vsyncadd [#allocation5], 4294967232  ;;  %v23_v0 = vlaneseq  ;;  %s38_s23 = smul.u32 2654435769, %s1182_s0  ;;  %s788_s0 = smov [#allocation7]  }
  0x13   :  { %s634_s1 = sshll.u32 %s788_s0, 4  ;;  %s635_s1 = int_to_ptr.vmem [resolvable:$true] %s634_s1 }
  0x14   :  { %v820_v1 = vshrl.u32 %v23_v0, 7  ;;  %v26_v2 = vand.u32 127, %v23_v0  ;;  %v39_v7 = vstv %s38_s23  ;;  %s754_s24 = scalar_lea.vmem %s635_s1, 64  ;;  %p759_p9 = scmp.lt.s32.totalorder %s635_s1, %s635_s1 }
  0x15   :  { %p755_p8 = scmp.ne.s32.totalorder %s635_s1, %s754_s24  ;;  %p760_p10 = scmp.lt.s32.totalorder %s754_s24, %s754_s24 }
  0x16   :  { %v27_v3 = vadd.s32 128, %v26_v2  ;;  %v28_v4 = vadd.s32 256, %v26_v2  ;;  %v29_v5 = vadd.s32 384, %v26_v2  ;;  %v32_v6 = vmul.u32 512, %v820_v1 }
  0x17   :  { %p761_p11 = por %p760_p10, %p759_p9 }
  0x18   :  { %v33_v8 = vadd.s32 %v32_v6, %v26_v2  ;;  %v34_v9 = vadd.s32 %v32_v6, %v27_v3  ;;  %v35_v10 = vadd.s32 %v32_v6, %v28_v4  ;;  %v36_v11 = vadd.s32 %v32_v6, %v29_v5 }
  0x19   :  { %p762_p12 = pnand %p761_p11, %p755_p8 }
  0x1a   :  { %v40_v12 = vadd.s32 %v39_v7, %v33_v8  ;;  %v41_v13 = vadd.s32 %v39_v7, %v34_v9  ;;  %v42_v14 = vadd.s32 %v39_v7, %v35_v10  ;;  %v43_v18 = vadd.s32 %v39_v7, %v36_v11 }
  0x1c   :  { %v643_v15 = vshrl.u32 %v40_v12, 16  ;;  %v644_v16 = vshrl.u32 %v41_v13, 16  ;;  %v645_v17 = vshrl.u32 %v42_v14, 16  ;;  %v646_v25 = vshrl.u32 %v43_v18, 16 }
  0x1e   :  { %v52_v19 = vxor.u32 %v643_v15, %v40_v12  ;;  %v53_v20 = vxor.u32 %v644_v16, %v41_v13  ;;  %v54_v21 = vxor.u32 %v645_v17, %v42_v14  ;;  %v55_v32 = vxor.u32 %v646_v25, %v43_v18 }
  0x1f   :  { %v781_v16 = vmov 683565275  }
  0x20   :  { %v56_v22 = vmul.u32 2246822507, %v52_v19  ;;  %v57_v23 = vmul.u32 2246822507, %v53_v20 }
  0x21   :  { %v58_v24 = vmul.u32 2246822507, %v54_v21  ;;  %v59_v38 = vmul.u32 2246822507, %v55_v32 }
  0x22   :  { %v647_v26 = vshrl.u32 %v56_v22, 13  ;;  %v648_v27 = vshrl.u32 %v57_v23, 13 }
  0x23   :  { %v649_v28 = vshrl.u32 %v58_v24, 13  ;;  %v650_v44 = vshrl.u32 %v59_v38, 13 }
  0x24   :  { %v68_v29 = vxor.u32 %v647_v26, %v56_v22  ;;  %v69_v30 = vxor.u32 %v648_v27, %v57_v23  ;;  %v782_v23 = vmov 2475754826   ;;  %v783_v27 = vmov 2131351028  }
  0x25   :  { %v70_v31 = vxor.u32 %v649_v28, %v58_v24  ;;  %v71_v50 = vxor.u32 %v650_v44, %v59_v38 }
  0x26   :  { %v72_v33 = vmul.u32 3266489955, %v68_v29  ;;  %v73_v34 = vmul.u32 3266489955, %v69_v30  ;;  %v784_v30 = vmov 2102212464  }
  0x27   :  { %v74_v35 = vmul.u32 3266489955, %v70_v31  ;;  %v75_v56 = vmul.u32 3266489955, %v71_v50 }
  0x28   :  { %v651_v36 = vshrl.u32 %v72_v33, 16  ;;  %v652_v37 = vshrl.u32 %v73_v34, 16 }
  0x29   :  { %v653_v41 = vshrl.u32 %v74_v35, 16  ;;  %v654_v61 = vshrl.u32 %v75_v56, 16 }
  0x2a   :  { %v824_v39 = vxor.u32 %v651_v36, %v72_v33  ;;  %v826_v40 = vxor.u32 %v652_v37, %v73_v34  ;;  %v785_v34 = vmov 920167782  }
  0x2b   :  { %v830_v47 = vxor.u32 %v653_v41, %v74_v35  ;;  %v839_v4 = vxor.u32 %v654_v61, %v75_v56  ;;  %v786_v41 = vmov 1326507024  }
  0x2c   :  { %v108_v42 = vand.u32 65535, %v824_v39  ;;  %v109_v43 = vand.u32 65535, %v826_v40 }
  0x2d   :  { %v110_v53 = vand.u32 65535, %v830_v47  ;;  %v111_v10 = vand.u32 65535, %v839_v4 }
  0x2e   :  { %v112_v45 = vcvt.s32.f32 %v108_v42  ;;  %v113_v46 = vcvt.s32.f32 %v109_v43 }
  0x2f   :  { %v114_v58 = vcvt.s32.f32 %v110_v53  ;;  %v115_v18 = vcvt.s32.f32 %v111_v10 }
  0x30   :  { %v116_v48 = vadd.f32 0.5, %v112_v45  ;;  %v117_v49 = vadd.f32 0.5, %v113_v46 }
  0x31   :  { %v118_v63 = vadd.f32 0.5, %v114_v58 }
  0x32   :  { %v120_v51 = vmul.f32 1.5258789e-05, %v116_v48  ;;  %v121_v52 = vmul.f32 1.5258789e-05, %v117_v49 }
  0x33   :  { %v122_v6 = vmul.f32 1.5258789e-05, %v118_v63 }
  0x34   :  { %v833_v54 = vmul.f32 6.2831855, %v120_v51  ;;  %v835_v55 = vmul.f32 6.2831855, %v121_v52 }
  0x35   :  { %v846_v13 = vmul.f32 6.2831855, %v122_v6 }
  0x36   :  { %v171_v57 = vand.u32 2139095040, %v833_v54  ;;  %v274_v60 = vand.u32 2139095040, %v835_v55  ;;  %v168_v5 = vand.u32 2147483647, %v833_v54  ;;  %v271_v12 = vand.u32 2147483647, %v835_v55 }
  0x37   :  { %v377_v25 = vand.u32 2139095040, %v846_v13 }
  0x38   :  { %v172_v59 = vshrl.u32 %v171_v57, 23  ;;  %v275_v2 = vshrl.u32 %v274_v60, 23  ;;  %v175_v11 = vand.u32 8388607, %v168_v5  ;;  %v278_v21 = vand.u32 8388607, %v271_v12 }
  0x39   :  { %v378_v44 = vshrl.u32 %v377_v25, 23 }
  0x3a   :  { %v659_v62 = vadd.s32 4294967169, %v172_v59  ;;  %v663_v8 = vadd.s32 4294967169, %v275_v2  ;;  %v176_v19 = vor.u32 8388608, %v175_v11  ;;  %v279_v60 = vor.u32 8388608, %v278_v21 }
  0x3b   :  { %v667_v61 = vadd.s32 4294967169, %v378_v44 }
  0x3c   :  { %v178_v3 = vadd.s32 1, %v659_v62  ;;  %v281_v15 = vadd.s32 1, %v663_v8  ;;  %v216_v48 = vshll.u32 %v176_v19, 8 }
  0x3e   :  { %vm179_vm0 = vcmp.gt.s32.totalorder %v178_v3, 0  ;;  %vm282_vm1 = vcmp.gt.s32.totalorder %v281_v15, 0 }
  0x3f   :  { %v180_v7 = vsel %vm179_vm0, %v178_v3, 0  ;;  %v283_v49 = vsel %vm282_vm1, %v281_v15, 0  ;;  %v384_v15 = vadd.s32 1, %v667_v61 }
  0x40   :  { %v182_v9 = vand.u32 31, %v180_v7  ;;  %v181_v20 = vshrl.u32 %v180_v7, 5  ;;  %v284_v2 = vshrl.u32 %v283_v49, 5  ;;  %v285_v3 = vand.u32 31, %v283_v49 }
  0x41   :  { %v119_v7 = vadd.f32 0.5, %v115_v18  ;;  %vm385_vm11 = vcmp.gt.s32.totalorder %v384_v15, 0 }
  0x42   :  { %v183_v14 = vsub.s32 32, %v182_v9  ;;  %v185_v17 = vshll.u32 %v781_v16, %v182_v9  ;;  %v188_v26 = vshll.u32 %v782_v23, %v182_v9  ;;  %v191_v29 = vshll.u32 %v783_v27, %v182_v9 }
  0x43   :  { %v194_v33 = vshll.u32 %v784_v30, %v182_v9  ;;  %v197_v36 = vshll.u32 %v785_v34, %v182_v9  ;;  %vm200_vm2 = vcmp.lt.s32.totalorder %v181_v20, 1  ;;  %vm202_vm3 = vcmp.lt.s32.totalorder %v181_v20, 3 }
  0x44   :  { %v184_v22 = vshrl.u32 %v781_v16, %v183_v14  ;;  %v186_v24 = vshrl.u32 %v782_v23, %v183_v14  ;;  %v189_v28 = vshrl.u32 %v783_v27, %v183_v14  ;;  %v192_v31 = vshrl.u32 %v784_v30, %v183_v14 }
  0x45   :  { %v195_v35 = vshrl.u32 %v785_v34, %v183_v14  ;;  %v198_v42 = vshrl.u32 %v786_v41, %v183_v14  ;;  %vm203_vm4 = vcmp.lt.s32.totalorder %v181_v20, 4  ;;  %vm201_vm5 = vcmp.lt.s32.totalorder %v181_v20, 2 }
  0x46   :  { %v187_v32 = vor.u32 %v186_v24, %v185_v17  ;;  %v190_v37 = vor.u32 %v189_v28, %v188_v26  ;;  %v193_v38 = vor.u32 %v192_v31, %v191_v29  ;;  %v870_v14 = vshll.u32 %v279_v60, 8 }
  0x47   :  { %v196_v43 = vor.u32 %v195_v35, %v194_v33  ;;  %v199_v45 = vor.u32 %v198_v42, %v197_v36  ;;  %v286_v19 = vsub.s32 32, %v285_v3  ;;  %v288_v20 = vshll.u32 %v781_v16, %v285_v3 }
  0x48   :  { %v205_v46 = vsel %vm203_vm4, %v193_v38, 2102212464  ;;  %v208_v50 = vsel %vm200_vm2, %v187_v32, %v190_v37  ;;  %v212_v52 = vsel %vm200_vm2, %v190_v37, %v193_v38  ;;  %v204_v53 = vsel %vm200_vm2, %v184_v22, %v187_v32 }
  0x49   :  { %v209_v51 = vsel %vm203_vm4, %v196_v43, 920167782  ;;  %v206_v56 = vsel %vm202_vm3, %v190_v37, %v205_v46  ;;  %v213_v58 = vsel %vm203_vm4, %v199_v45, 1326507024  ;;  %vm303_vm6 = vcmp.lt.s32.totalorder %v284_v2, 1 }
  0x4a   :  { %v210_v57 = vsel %vm202_vm3, %v193_v38, %v209_v51  ;;  %v214_v59 = vsel %vm202_vm3, %v196_v43, %v213_v58  ;;  %v207_v6 = vsel %vm201_vm5, %v204_v53, %v206_v56  ;;  %v291_v21 = vshll.u32 %v782_v23, %v285_v3 }
  0x4b   :  { %v211_v62 = vsel %vm201_vm5, %v208_v50, %v210_v57  ;;  %v215_v63 = vsel %vm201_vm5, %v212_v52, %v214_v59  ;;  %v223_v17 = vmul.u32 %v216_v48, %v207_v6  ;;  %v294_v22 = vshll.u32 %v783_v27, %v285_v3 }
  0x4c   :  { %v863_v8 = vmul.u32.u64.low %v216_v48, %v215_v63  ;;  %v864_v9 = vmul.u32.u64.high %v216_v48, %v215_v63, %v863_v8  ;;  %v866_v10 = vmul.u32.u64.low %v216_v48, %v211_v62  ;;  %v867_v11 = vmul.u32.u64.high %v216_v48, %v211_v62, %v866_v10 }
  0x4d   :  { %v297_v18 = vshll.u32 %v784_v30, %v285_v3  ;;  %v300_v24 = vshll.u32 %v785_v34, %v285_v3  ;;  %v287_v25 = vshrl.u32 %v781_v16, %v286_v19  ;;  %v289_v26 = vshrl.u32 %v782_v23, %v286_v19 }
  0x4e   :  { %vm225_vm7 = vc.u32 %v864_v9, %v866_v10  ;;  %vm304_vm8 = vcmp.lt.s32.totalorder %v284_v2, 2  ;;  %v226_v28 = vadd.s32 1, %v867_v11  ;;  %v292_v29 = vshrl.u32 %v783_v27, %v286_v19 }
  0x4f   :  { %v295_v31 = vshrl.u32 %v784_v30, %v286_v19  ;;  %v298_v32 = vshrl.u32 %v785_v34, %v286_v19  ;;  %v290_v33 = vor.u32 %v289_v26, %v288_v20  ;;  %v301_v35 = vshrl.u32 %v786_v41, %v286_v19 }
  0x50   :  { %vm305_vm9 = vcmp.lt.s32.totalorder %v284_v2, 3  ;;  %vm306_vm10 = vcmp.lt.s32.totalorder %v284_v2, 4  ;;  %v227_v36 = vsel %vm225_vm7, %v226_v28, %v867_v11  ;;  %v293_v37 = vor.u32 %v292_v29, %v291_v21 }
  0x51   :  { %v296_v38 = vor.u32 %v295_v31, %v294_v22  ;;  %v299_v42 = vor.u32 %v298_v32, %v297_v18  ;;  %v228_v43 = vadd.s32 %v227_v36, %v223_v17  ;;  %v302_v44 = vor.u32 %v301_v35, %v300_v24 }
  0x52   :  { %v307_v45 = vsel %vm303_vm6, %v287_v25, %v290_v33  ;;  %v311_v48 = vsel %vm303_vm6, %v290_v33, %v293_v37  ;;  %v386_v60 = vsel %vm385_vm11, %v384_v15, 0  ;;  %v123_v20 = vmul.f32 1.5258789e-05, %v119_v7 }
  0x53   :  { %v308_v46 = vsel %vm306_vm10, %v296_v38, 2102212464  ;;  %v312_v49 = vsel %vm306_vm10, %v299_v42, 920167782  ;;  %v315_v50 = vsel %vm303_vm6, %v293_v37, %v296_v38  ;;  %v229_v51 = vadd.s32 536870912, %v228_v43 }
  0x54   :  { %v309_v52 = vsel %vm305_vm9, %v293_v37, %v308_v46  ;;  %v313_v53 = vsel %vm305_vm9, %v296_v38, %v312_v49  ;;  %v316_v56 = vsel %vm306_vm10, %v302_v44, 1326507024  ;;  %v388_v17 = vand.u32 31, %v386_v60 }
  0x55   :  { %v310_v57 = vsel %vm304_vm8, %v307_v45, %v309_v52  ;;  %v314_v58 = vsel %vm304_vm8, %v311_v48, %v313_v53  ;;  %v317_v59 = vsel %vm305_vm9, %v299_v42, %v316_v56  ;;  %v898_v61 = vshrl.u32 %v229_v51, 30 }
  0x56   :  { %v318_v62 = vsel %vm304_vm8, %v315_v50, %v317_v59  ;;  %v902_v63 = vmul.u32.u64.low %v870_v14, %v314_v58  ;;  %v903_v3 = vmul.u32.u64.high %v870_v14, %v314_v58, %v902_v63  ;;  %v326_v19 = vmul.u32 %v870_v14, %v310_v57 }
  0x57   :  { %v907_v6 = vmul.u32.u64.low %v870_v14, %v318_v62  ;;  %v908_v8 = vmul.u32.u64.high %v870_v14, %v318_v62, %v907_v6  ;;  %v231_v11 = vshll.u32 %v898_v61, 30  ;;  %v389_v21 = vsub.s32 32, %v388_v17 }
  0x58   :  { %v329_v2 = vadd.s32 1, %v903_v3  ;;  %v374_v22 = vand.u32 2147483647, %v846_v13  ;;  %v387_v18 = vshrl.u32 %v386_v60, 5  ;;  %v391_v25 = vshll.u32 %v781_v16, %v388_v17 }
  0x59   :  { %v912_v15 = vsub.s32 %v228_v43, %v231_v11  ;;  %vm328_vm12 = vc.u32 %v908_v8, %v902_v63  ;;  %v392_v28 = vshrl.u32 %v782_v23, %v389_v21  ;;  %v394_v7 = vshll.u32 %v782_v23, %v388_v17 }
  0x5a   :  { %v330_v24 = vsel %vm328_vm12, %v329_v2, %v903_v3  ;;  %v395_v14 = vshrl.u32 %v783_v27, %v389_v21  ;;  %v923_v29 = vmul.f32 6.2831855, %v123_v20  ;;  %v381_v33 = vand.u32 8388607, %v374_v22 }
  0x5b   :  { %v331_v26 = vadd.s32 %v330_v24, %v326_v19  ;;  %v234_v31 = vsub.s32 0, %v912_v15  ;;  %v397_v35 = vshll.u32 %v783_v27, %v388_v17  ;;  %vm409_vm13 = vcmp.lt.s32.totalorder %v387_v18, 4 }
  0x5c   :  { %v393_v36 = vor.u32 %v392_v28, %v391_v25  ;;  %v398_v37 = vshrl.u32 %v784_v30, %v389_v21  ;;  %v400_v38 = vshll.u32 %v784_v30, %v388_v17  ;;  %v401_v42 = vshrl.u32 %v785_v34, %v389_v21 }
  0x5d   :  { %v332_v32 = vadd.s32 536870912, %v331_v26  ;;  %v396_v44 = vor.u32 %v395_v14, %v394_v7  ;;  %v403_v45 = vshll.u32 %v785_v34, %v388_v17  ;;  %v404_v46 = vshrl.u32 %v786_v41, %v389_v21 }
  0x5e   :  { %v660_v48 = vmin.u32 %v234_v31, %v912_v15  ;;  %v402_v49 = vor.u32 %v401_v42, %v400_v38  ;;  %vm406_vm14 = vcmp.lt.s32.totalorder %v387_v18, 1  ;;  %v382_v51 = vor.u32 8388608, %v381_v33 }
  0x5f   :  { %v932_v43 = vshrl.u32 %v332_v32, 30  ;;  %v390_v52 = vshrl.u32 %v781_v16, %v389_v21  ;;  %v399_v53 = vor.u32 %v398_v37, %v397_v35  ;;  %v405_v56 = vor.u32 %v404_v46, %v403_v45 }
  0x60   :  { %vm408_vm15 = vcmp.lt.s32.totalorder %v387_v18, 3  ;;  %v415_v57 = vsel %vm409_vm13, %v402_v49, 920167782  ;;  %v480_v58 = vand.u32 2139095040, %v923_v29  ;;  %vm407_vm0 = vcmp.lt.s32.totalorder %v387_v18, 2 }
  0x61   :  { %v334_v50 = vshll.u32 %v932_v43, 30  ;;  %v411_v60 = vsel %vm409_vm13, %v399_v53, 2102212464  ;;  %v414_v62 = vsel %vm406_vm14, %v393_v36, %v396_v44  ;;  %v655_v3 = vshrl.u32 %v824_v39, 16 }
  0x62   :  { %v236_v6 = vclz %v660_v48  ;;  %v410_v17 = vsel %vm406_vm14, %v390_v52, %v393_v36  ;;  %v416_v19 = vsel %vm408_vm15, %v399_v53, %v415_v57  ;;  %v422_v20 = vshll.u32 %v382_v51, 8 }
  0x63   :  { %v941_v59 = vsub.s32 %v331_v26, %v334_v50  ;;  %v412_v2 = vsel %vm408_vm15, %v396_v44, %v411_v60  ;;  %v417_v21 = vsel %vm407_vm0, %v414_v62, %v416_v19  ;;  %v418_v24 = vsel %vm406_vm14, %v396_v44, %v399_v53 }
  0x64   :  { %v419_v25 = vsel %vm409_vm13, %v405_v56, 1326507024  ;;  %v481_v26 = vshrl.u32 %v480_v58, 23  ;;  %v661_v28 = vadd.s32 4294967294, %v236_v6  ;;  %v413_v14 = vsel %vm407_vm0, %v410_v17, %v412_v2 }
  0x65   :  { %v337_v11 = vsub.s32 0, %v941_v59  ;;  %v420_v7 = vsel %vm408_vm15, %v402_v49, %v419_v25  ;;  %v957_v32 = vmul.u32.u64.low %v422_v20, %v417_v21  ;;  %v958_v33 = vmul.u32.u64.high %v422_v20, %v417_v21, %v957_v32 }
  0x66   :  { %v421_v31 = vsel %vm407_vm0, %v418_v24, %v420_v7  ;;  %v96_v35 = vcvt.s32.f32 %v655_v3  ;;  %v671_v38 = vadd.s32 4294967169, %v481_v26  ;;  %v429_v44 = vmul.u32 %v422_v20, %v413_v14 }
  0x67   :  { %v664_v39 = vmin.u32 %v337_v11, %v941_v59  ;;  %v961_v36 = vmul.u32.u64.low %v422_v20, %v421_v31  ;;  %v962_v37 = vmul.u32.u64.high %v422_v20, %v421_v31, %v961_v36  ;;  %vm662_vm1 = vcmp.lt.s32.totalorder %v661_v28, 0 }
  0x68   :  { %v432_v45 = vadd.s32 1, %v958_v33  ;;  %v487_v46 = vadd.s32 1, %v671_v38  ;;  %v656_v48 = vshrl.u32 %v826_v40, 16  ;;  %v100_v49 = vadd.f32 0.5, %v96_v35 }
  0x69   :  { %v339_v42 = vclz %v664_v39  ;;  %vm431_vm2 = vc.u32 %v962_v37, %v957_v32  ;;  %v239_v50 = vsel %vm662_vm1, 0, %v661_v28  ;;  %v657_v53 = vshrl.u32 %v830_v47, 16 }
  0x6a   :  { %v433_v18 = vsel %vm431_vm2, %v432_v45, %v958_v33  ;;  %vm488_vm3 = vcmp.gt.s32.totalorder %v487_v46, 0  ;;  %v97_v57 = vcvt.s32.f32 %v656_v48  ;;  %v104_v58 = vmul.f32 1.5258789e-05, %v100_v49 }
  0x6b   :  { %v665_v51 = vadd.s32 4294967294, %v339_v42  ;;  %v434_v52 = vadd.s32 %v433_v18, %v429_v44  ;;  %v489_v56 = vsel %vm488_vm3, %v487_v46, 0  ;;  %v224_v40 = vadd.s32 %v866_v10, %v864_v9 }
  0x6c   :  { %v491_v62 = vand.u32 31, %v489_v56  ;;  %v240_v3 = vsub.s32 32, %v239_v50  ;;  %v244_v6 = vsub.s32 4294967266, %v239_v50  ;;  %v658_v19 = vshrl.u32 %v839_v4, 16 }
  0x6d   :  { %v435_v60 = vadd.s32 536870912, %v434_v52  ;;  %vm666_vm4 = vcmp.lt.s32.totalorder %v665_v51, 0  ;;  %v975_v20 = vcvt.s32.f32 %v657_v53  ;;  %v477_v47 = vand.u32 2147483647, %v923_v29 }
  0x6e   :  { %v492_v17 = vsub.s32 32, %v491_v62  ;;  %v978_v2 = vadd.f32 0.5, %v97_v57  ;;  %700 = vlog2.f32 %v104_v58  ;;  %v241_v21 = vshll.u32 %v912_v15, %v239_v50 }
  0x6f   :  { %v972_v11 = vshrl.u32 %v435_v60, 30  ;;  %v242_v9 = vshrl.u32 %v224_v40, %v240_v3  ;;  %v245_v10 = vadd.s32 127, %v244_v6  ;;  %v982_v25 = vsel %vm666_vm4, 0, %v665_v51 }
  0x70   :  { %v494_v26 = vshll.u32 %v781_v16, %v491_v62  ;;  %v495_v39 = vshrl.u32 %v782_v23, %v492_v17  ;;  %v497_v7 = vshll.u32 %v782_v23, %v491_v62  ;;  %v498_v14 = vshrl.u32 %v783_v27, %v492_v17 }
  0x71   :  { %v437_v24 = vshll.u32 %v972_v11, 30  ;;  %v484_v31 = vand.u32 8388607, %v477_v47  ;;  %v490_v15 = vshrl.u32 %v489_v56, 5  ;;  %v500_v33 = vshll.u32 %v783_v27, %v491_v62 }
  0x72   :  { %v503_v35 = vshll.u32 %v784_v30, %v491_v62  ;;  %v501_v38 = vshrl.u32 %v784_v30, %v492_v17  ;;  %v504_v42 = vshrl.u32 %v785_v34, %v492_v17  ;;  %v506_v44 = vshll.u32 %v785_v34, %v491_v62 }
  0x73   :  { %v985_v28 = vsub.s32 %v434_v52, %v437_v24  ;;  %v246_v45 = vshll.u32 %v245_v10, 23  ;;  %v327_v23 = vadd.s32 %v902_v63, %v908_v8  ;;  %v347_v46 = vsub.s32 4294967266, %v982_v25 }
  0x74   :  { %v507_v48 = vshrl.u32 %v786_v41, %v492_v17  ;;  %v1002_v49 = vor.u32 %v242_v9, %v241_v21  ;;  %v496_v18 = vor.u32 %v495_v39, %v494_v26  ;;  %v499_v50 = vor.u32 %v498_v14, %v497_v7 }
  0x75   :  { %v440_v36 = vsub.s32 0, %v985_v28  ;;  %v485_v51 = vor.u32 8388608, %v484_v31  ;;  %v493_v30 = vshrl.u32 %v781_v16, %v492_v17  ;;  %v505_v52 = vor.u32 %v504_v42, %v503_v35 }
  0x76   :  { %vm509_vm5 = vcmp.lt.s32.totalorder %v490_v15, 1  ;;  %v502_v53 = vor.u32 %v501_v38, %v500_v33  ;;  %v508_v56 = vor.u32 %v507_v48, %v506_v44  ;;  %vm512_vm6 = vcmp.lt.s32.totalorder %v490_v15, 4 }
  0x77   :  { %v668_v27 = vmin.u32 %v440_v36, %v985_v28  ;;  %v247_v63 = vor.u32 4788187, %v246_v45  ;;  %v343_v8 = vsub.s32 32, %v982_v25  ;;  %v348_v57 = vadd.s32 127, %v347_v46 }
  0x78   :  { %vm511_vm7 = vcmp.lt.s32.totalorder %v490_v15, 3  ;;  %v701_v41 = vpop.eup %700  ;;  %vm510_vm8 = vcmp.lt.s32.totalorder %v490_v15, 2  ;;  %v514_v60 = vsel %vm512_vm6, %v502_v53, 2102212464  ;;  %v517_v62 = vsel %vm509_vm5, %v496_v18, %v499_v50 }
  0x79   :  { %v442_v34 = vclz %v668_v27  ;;  %v430_v16 = vadd.s32 %v957_v32, %v962_v37  ;;  %v513_v40 = vsel %vm509_vm5, %v493_v30, %v496_v18  ;;  %v518_v3 = vsel %vm512_vm6, %v505_v52, 920167782 }
  0x7a   :  { %v525_v6 = vshll.u32 %v485_v51, 8  ;;  %v519_v17 = vsel %vm511_vm7, %v502_v53, %v518_v3  ;;  %v521_v21 = vsel %vm509_vm5, %v499_v50, %v502_v53  ;;  %v522_v24 = vsel %vm512_vm6, %v508_v56, 1326507024 }
  0x7b   :  { %v669_v58 = vadd.s32 4294967294, %v442_v34  ;;  %v515_v10 = vsel %vm511_vm7, %v499_v50, %v514_v60  ;;  %v520_v26 = vsel %vm510_vm8, %v517_v62, %v519_v17  ;;  %v523_v39 = vsel %vm511_vm7, %v505_v52, %v522_v24 }
  0x7c   :  { %v344_v32 = vshll.u32 %v941_v59, %v982_v25  ;;  %v345_v37 = vshrl.u32 %v327_v23, %v343_v8  ;;  %v349_v7 = vshll.u32 %v348_v57, 23  ;;  %v524_v33 = vsel %vm510_vm8, %v521_v21, %v523_v39 }
  0x7d   :  { %vm670_vm9 = vcmp.lt.s32.totalorder %v669_v58, 0  ;;  %v1022_v35 = vmul.u32.u64.low %v525_v6, %v520_v26  ;;  %v1023_v36 = vmul.u32.u64.high %v525_v6, %v520_v26, %v1022_v35  ;;  %v516_v42 = vsel %vm510_vm8, %v513_v40, %v515_v10 }
  0x7e   :  { %v445_v9 = vsel %vm670_vm9, 0, %v669_v58  ;;  %v1027_v44 = vmul.u32.u64.low %v525_v6, %v524_v33  ;;  %v1028_v45 = vmul.u32.u64.high %v525_v6, %v524_v33, %v1027_v44  ;;  %v99_v46 = vcvt.s32.f32 %v658_v19 }
  0x7f   :  { %v450_v14 = vsub.s32 4294967266, %v445_v9  ;;  %v446_v31 = vsub.s32 32, %v445_v9  ;;  %v105_v59 = vmul.f32 1.5258789e-05, %v978_v2  ;;  %v102_v25 = vadd.f32 0.5, %v975_v20 }
  0x80   :  { %v346_v23 = vor.u32 %v345_v37, %v344_v32  ;;  %v350_v48 = vor.u32 4788187, %v349_v7  ;;  %v447_v27 = vshll.u32 %v985_v28, %v445_v9  ;;  %v532_v51 = vmul.u32 %v525_v6, %v516_v42 }
  0x81   :  { %v451_v38 = vadd.s32 127, %v450_v14  ;;  %v448_v18 = vshrl.u32 %v430_v16, %v446_v31  ;;  %v535_v15 = vadd.s32 1, %v1023_v36  ;;  %v248_v30 = vand.u32 2147483647, %v247_v63 }
  0x82   :  { %v250_v52 = vcvt.s32.f32 %v1002_v49  ;;  %702 = vlog2.f32 %v105_v59  ;;  %vm534_vm10 = vc.u32 %v1028_v45, %v1022_v35  ;;  %v103_v4 = vadd.f32 0.5, %v99_v46 }
  0x83   :  { %v452_v50 = vshll.u32 %v451_v38, 23  ;;  %v351_v19 = vand.u32 2147483647, %v350_v48  ;;  %v353_v2 = vcvt.s32.f32 %v346_v23  ;;  %v536_v20 = vsel %vm534_vm10, %v535_v15, %v1023_v36 }
  0x84   :  { %v106_v34 = vmul.f32 1.5258789e-05, %v102_v25  ;;  %v449_v53 = vor.u32 %v448_v18, %v447_v27  ;;  %v537_v56 = vadd.s32 %v536_v20, %v532_v51  ;;  %v251_v8 = vmul.f32 %v250_v52, %v248_v30 }
  0x85   :  { %v453_v28 = vor.u32 4788187, %v452_v50  ;;  %v107_v58 = vmul.f32 1.5258789e-05, %v103_v4  ;;  %v354_v60 = vmul.f32 %v353_v2, %v351_v19  ;;  %v125_v40 = vmul.f32 0.6931472, %v701_v41 }
  0x86   :  { %v538_v57 = vadd.s32 536870912, %v537_v56  ;;  %704 = vlog2.f32 %v106_v34  ;;  %v456_v49 = vcvt.s32.f32 %v449_v53  ;;  %v252_v16 = vxor.u32 2147483648, %v251_v8 }
  0x87   :  { %v454_v63 = vand.u32 2147483647, %v453_v28  ;;  %vm170_vm11 = vcmp.lt.s32.totalorder %v833_v54, 0  ;;  %v355_v6 = vxor.u32 2147483648, %v354_v60  ;;  %706 = vlog2.f32 %v107_v58 }
  0x88   :  { %v1040_v62 = vshrl.u32 %v538_v57, 30  ;;  %vm273_vm12 = vcmp.lt.s32.totalorder %v835_v55, 0  ;;  %vm1047_vm13 = vcmp.le.f32.partialorder %v168_v5, 0.7853982  ;;  %v253_v41 = vsel %vm170_vm11, %v252_v16, %v251_v8 }
  0x89   :  { %v457_v21 = vmul.f32 %v456_v49, %v454_v63  ;;  %v1053_v10 = vmul.f32 -2.0, %v125_v40  ;;  %vm1057_vm14 = vcmp.le.f32.partialorder %v271_v12, 0.7853982  ;;  %v356_v37 = vsel %vm273_vm12, %v355_v6, %v354_v60 }
  0x8a   :  { %v540_v3 = vshll.u32 %v1040_v62, 30  ;;  %v256_v5 = vsel %vm1047_vm13, %v833_v54, %v253_v41  ;;  %vm376_vm15 = vcmp.lt.s32.totalorder %v846_v13, 0  ;;  %v359_v12 = vsel %vm1057_vm14, %v835_v55, %v356_v37 }
  0x8b   :  { %v458_v7 = vxor.u32 2147483648, %v457_v21  ;;  %708 = vrsqrt.f32 %v1053_v10  ;;  %vm1075_vm0 = vcmp.le.f32.partialorder %v374_v22, 0.7853982  ;;  %v254_v42 = vsub.s32 4, %v898_v61 }
  0x8c   :  { %v703_v17 = vpop.eup %702  ;;  %v541_v24 = vsub.s32 %v537_v56, %v540_v3  ;;  %710 = vcosq.f32 %v256_v5  ;;  %v357_v23 = vsub.s32 4, %v932_v43  ;;  %v533_v48 = vadd.s32 %v1022_v35, %v1028_v45 }
  0x8d   :  { %v127_v39 = vmul.f32 0.6931472, %v703_v17  ;;  %712 = vsinq.f32 %v256_v5  ;;  %v459_v44 = vsel %vm376_vm15, %v458_v7, %v457_v21  ;;  %v255_v18 = vsel %vm170_vm11, %v254_v42, %v898_v61 }
  0x8e   :  { %v543_v26 = vsub.s32 0, %v541_v24  ;;  %714 = vcosq.f32 %v359_v12  ;;  %v462_v22 = vsel %vm1075_vm0, %v846_v13, %v459_v44  ;;  %v358_v35 = vsel %vm273_vm12, %v357_v23, %v932_v43 }
  0x8f   :  { %v1071_v36 = vmul.f32 -2.0, %v127_v39  ;;  %716 = vsinq.f32 %v359_v12  ;;  %v257_v19 = vsel %vm1047_vm13, 0, %v255_v18  ;;  %v460_v2 = vsub.s32 4, %v972_v11 }
  0x90   :  { %v672_v14 = vmin.u32 %v543_v26, %v541_v24  ;;  %v705_v31 = vpop.eup %704  ;;  %v360_v43 = vsel %vm1057_vm14, 0, %v358_v35  ;;  %v261_v8 = vand.u32 3, %v257_v19  ;;  %vm138_vm2 = vcmp.eq.f32.partialorder %v1053_v10, inf }
  0x91   :  { %v129_v59 = vmul.f32 0.6931472, %v705_v31  ;;  %v707_v25 = vpop.eup %706  ;;  %718 = vrsqrt.f32 %v1071_v36  ;;  %v461_v63 = vsel %vm376_vm15, %v460_v2, %v972_v11  ;;  %v364_v16 = vand.u32 3, %v360_v43 }
  0x92   :  { %v545_v33 = vclz %v672_v14  ;;  %v131_v30 = vmul.f32 0.6931472, %v707_v25  ;;  %720 = vcosq.f32 %v462_v22  ;;  %vm1112_vm3 = vcmp.le.f32.partialorder %v477_v47, 0.7853982 }
  0x93   :  { %v1092_v52 = vmul.f32 -2.0, %v129_v59  ;;  %722 = vsinq.f32 %v462_v22  ;;  %vm479_vm4 = vcmp.lt.s32.totalorder %v923_v29, 0  ;;  %vm140_vm5 = vcmp.eq.f32.partialorder %v1053_v10, 0.0 }
  0x94   :  { %v673_v46 = vadd.s32 4294967294, %v545_v33  ;;  %v1100_v28 = vmul.f32 -2.0, %v131_v30  ;;  %vm263_vm6 = vcmp.eq.s32.totalorder %v261_v8, 0  ;;  %v463_v17 = vsel %vm1075_vm0, 0, %v461_v63 }
  0x95   :  { %v709_v61 = vpop.eup %708  ;;  %724 = vrsqrt.f32 %v1092_v52  ;;  %vm260_vm7 = vweird.f32 %v833_v54  ;;  %vm266_vm8 = vcmp.eq.s32.totalorder %v261_v8, 2  ;;  %vm363_vm9 = vweird.f32 %v835_v55 }
  0x96   :  { %vm674_vm1 = vcmp.lt.s32.totalorder %v673_v46, 0  ;;  %v711_v53 = vpop.eup %710  ;;  %726 = vrsqrt.f32 %v1100_v28  ;;  %vm366_vm10 = vcmp.eq.s32.totalorder %v364_v16, 0  ;;  %vm369_vm11 = vcmp.eq.s32.totalorder %v364_v16, 2 }
  0x97   :  { %v548_v27 = vsel %vm674_vm1, 0, %v673_v46  ;;  %v713_v56 = vpop.eup %712  ;;  %v267_v11 = vxor.u32 2147483648, %v711_v53  ;;  %v563_v39 = vsub.s32 4, %v1040_v62  ;;  %v137_v37 = vmul.f32 %v709_v61, %v1053_v10 }
  0x98   :  { %v549_v50 = vsub.s32 32, %v548_v27  ;;  %v550_v51 = vshll.u32 %v541_v24, %v548_v27  ;;  %v553_v15 = vsub.s32 4294967266, %v548_v27  ;;  %v715_v60 = vpop.eup %714  ;;  %v264_v24 = vxor.u32 2147483648, %v713_v56 }
  0x99   :  { %v717_v49 = vpop.eup %716  ;;  %v370_v9 = vxor.u32 2147483648, %v715_v60  ;;  %vm145_vm12 = vcmp.eq.f32.partialorder %v1071_v36, inf  ;;  %v467_v7 = vand.u32 3, %v463_v17  ;;  %vm262_vm13 = vcmp.lt.s32.totalorder %v261_v8, 2 }
  0x9a   :  { %v551_v45 = vshrl.u32 %v533_v48, %v549_v50  ;;  %v554_v4 = vadd.s32 127, %v553_v15  ;;  %v367_v47 = vxor.u32 2147483648, %v717_v49  ;;  %v268_v14 = vsel %vm266_vm8, %v267_v11, %v713_v56 }
  0x9b   :  { %v719_v3 = vpop.eup %718  ;;  %vm365_vm14 = vcmp.lt.s32.totalorder %v364_v16, 2  ;;  %v265_v33 = vsel %vm263_vm6, %v711_v53, %v264_v24  ;;  %v371_v42 = vsel %vm369_vm11, %v370_v9, %v717_v49  ;;  %v564_v25 = vsel %vm479_vm4, %v563_v39, %v1040_v62 }
  0x9c   :  { %v552_v20 = vor.u32 %v551_v45, %v550_v51  ;;  %v555_v34 = vshll.u32 %v554_v4, 23  ;;  %v721_v41 = vpop.eup %720  ;;  %v144_v5 = vmul.f32 %v719_v3, %v1071_v36  ;;  %v368_v38 = vsel %vm366_vm10, %v715_v60, %v367_v47 }
  0x9d   :  { %v723_v32 = vpop.eup %722  ;;  %v473_v59 = vxor.u32 2147483648, %v721_v41  ;;  %v141_v23 = vand.u32 2147483648, %v1053_v10  ;;  %vm469_vm15 = vcmp.eq.s32.totalorder %v467_v7, 0  ;;  %vm472_vm0 = vcmp.eq.s32.totalorder %v467_v7, 2 }
  0x9e   :  { %v556_v57 = vor.u32 4788187, %v555_v34  ;;  %v559_v58 = vcvt.s32.f32 %v552_v20  ;;  %v470_v46 = vxor.u32 2147483648, %v723_v32  ;;  %v139_v48 = vsel %vm138_vm2, %v1053_v10, %v137_v37 }
  0x9f   :  { %v725_v12 = vpop.eup %724  ;;  %vm147_vm1 = vcmp.eq.f32.partialorder %v1071_v36, 0.0  ;;  %v148_v22 = vand.u32 2147483648, %v1071_v36  ;;  %v146_v62 = vsel %vm145_vm12, %v1071_v36, %v144_v5  ;;  %v269_v50 = vsel %vm262_vm13, %v265_v33, %v268_v14  ;;  %v592_v5 = vld [vmem:[#allocation4] sm:$0xf] }
  0xa0   :  { %v557_v40 = vand.u32 2147483647, %v556_v57  ;;  %v151_v27 = vmul.f32 %v725_v12, %v1092_v52  ;;  %v727_v18 = vpop.eup %726  ;;  %v372_v51 = vsel %vm365_vm14, %v368_v38, %v371_v42  ;;  %v566_v15 = vsel %vm1112_vm3, 0, %v564_v25 }
  0xa1   :  { %vm152_vm2 = vcmp.eq.f32.partialorder %v1092_v52, inf  ;;  %v471_v30 = vsel %vm469_vm15, %v721_v41, %v470_v46  ;;  %v474_v35 = vsel %vm472_vm0, %v473_v59, %v723_v32  ;;  %v142_v45 = vsel %vm140_vm5, %v141_v23, %v139_v48 }
  0xa2   :  { %v560_v21 = vmul.f32 %v559_v58, %v557_v40  ;;  %v155_v4 = vand.u32 2147483648, %v1092_v52  ;;  %vm466_vm6 = vweird.f32 %v846_v13  ;;  %v149_v36 = vsel %vm147_vm1, %v148_v22, %v146_v62 }
  0xa3   :  { %v270_v19 = vsel %vm260_vm7, nan, %v269_v50  ;;  %v373_v2 = vsel %vm363_vm9, nan, %v372_v51  ;;  %v570_v61 = vand.u32 3, %v566_v15  ;;  %v153_v20 = vsel %vm152_vm2, %v1092_v52, %v151_v27 }
  0xa4   :  { %v561_v26 = vxor.u32 2147483648, %v560_v21  ;;  %v158_v34 = vmul.f32 %v727_v18, %v1100_v28  ;;  %vm159_vm5 = vcmp.eq.f32.partialorder %v1100_v28, inf  ;;  %v787_v53 = vmov 1966171168  }
  0xa5   :  { %v600_v43 = vunpack.c.l.s4 %v787_v53  ;;  %v580_v56 = vmul.f32 %v270_v19, %v142_v45  ;;  %v581_v8 = vmul.f32 %v373_v2, %v149_v36  ;;  %v162_v58 = vand.u32 2147483648, %v1100_v28 }
  0xa6   :  { %v562_v31 = vsel %vm479_vm4, %v561_v26, %v560_v21  ;;  %vm468_vm4 = vcmp.lt.s32.totalorder %v467_v7, 2  ;;  %vm575_vm7 = vcmp.eq.s32.totalorder %v570_v61, 2  ;;  %vm161_vm8 = vcmp.eq.f32.partialorder %v1100_v28, 0.0 }
  0xa7   :  { %v565_v44 = vsel %vm1112_vm3, %v923_v29, %v562_v31  ;;  %vm154_vm3 = vcmp.eq.f32.partialorder %v1092_v52, 0.0  ;;  %v475_v10 = vsel %vm468_vm4, %v471_v30, %v474_v35  ;;  %v160_v52 = vsel %vm159_vm5, %v1100_v28, %v158_v34 }
  0xa8   :  { %728 = vcosq.f32 %v565_v44  ;;  %v156_v54 = vsel %vm154_vm3, %v155_v4, %v153_v20  ;;  %v476_v55 = vsel %vm466_vm6, nan, %v475_v10  ;;  %vm572_vm9 = vcmp.eq.s32.totalorder %v570_v61, 0 }
  0xa9   :  { %730 = vsinq.f32 %v565_v44  ;;  %vm569_vm10 = vweird.f32 %v923_v29  ;;  %vm571_vm11 = vcmp.lt.s32.totalorder %v570_v61, 2  ;;  %v601_v16 = vunpack.c.0.s8 %v600_v43 }
  0xaa   :  { %v582_v3 = vmul.f32 %v476_v55, %v156_v54  ;;  %v584_v6 = vmul.f32 0.2, %v580_v56  ;;  %v585_v11 = vmul.f32 0.2, %v581_v8  ;;  %v163_v17 = vsel %vm161_vm8, %v162_v58, %v160_v52 }
  0xab   :  { %v604_v28 = vsub.s32 %v601_v16, %v820_v1  ;;  %vm625_vm12 = vcmp.lt.s32.totalorder %v23_v0, 512 }
  0xac   :  { %v586_v9 = vmul.f32 0.2, %v582_v3  ;;  %v597_v41 = vcombine.low %v584_v6, %v585_v11 }
  0xae   :  { %v605_v32 = vrot.slane %v597_v41, %v604_v28 }
  0xb2   :  { %v729_v57 = vpop.eup %728 }
  0xb3   :  { %v731_v60 = vpop.eup %730  ;;  %v576_v63 = vxor.u32 2147483648, %v729_v57 }
  0xb4   :  { %v573_v49 = vxor.u32 2147483648, %v731_v60 }
  0xb5   :  { %v577_v40 = vsel %vm575_vm7, %v576_v63, %v731_v60 }
  0xb6   :  { %v574_v13 = vsel %vm572_vm9, %v729_v57, %v573_v49 }
  0xb7   :  { %v578_v21 = vsel %vm571_vm11, %v574_v13, %v577_v40 }
  0xb8   :  { %v579_v24 = vsel %vm569_vm10, nan, %v578_v21 }
  0xb9   :  { %v583_v47 = vmul.f32 %v579_v24, %v163_v17 }
  0xbb   :  { %v587_v26 = vmul.f32 0.2, %v583_v47 }
  0xbd   :  { %v598_v39 = vcombine.low %v586_v9, %v587_v26 }
  0xbf   :  { %v612_v29 = vrot.slane %v598_v39, %v604_v28 }
  0xc1   :  { %v613_v37 = vcombine.low %v605_v32, %v612_v29 }
  0xc3   :  { %v620_v7 = vrot.slane %v613_v37, %v604_v28 }
  0xc5   :  { %v622_v14 = vadd.f32 %v620_v7, %v592_v5 }
  0xc7   :  { %627 = vst.msk [vmem:[#allocation7] sm:$0xf] %vm625_vm12, %v622_v14 }
  0xc8   :  { %765 = shalt.err (!%p762_p12)
}
  0xc9   :  { %s766_s27 = scalar_lea.hbm %s1184_s2, 64 }
  0xca   :  { %p767_p13 = scmp.ne.s32.totalorder %s1184_s2, %s766_s27  ;;  %p770_p0 = scmp.lt.u32.totalorder %s766_s27, %s1184_s2 }
  0xcc   :  { %p772_p1 = pnand %p770_p0, %p767_p13 }
  0xce   :  { %775 = shalt.err (!%p772_p1)
}
  0xcf   :  { %637 = dma.vmem_to_hbm [thread:$0]  %s635_s1, 64, %s1184_s2, [#allocation6]  }
  0xd0   :  { %778 = dma.done.wait [#allocation6], 64  }
  0xd1   :  { %779 = vsyncadd [#allocation6], 4294967232 }
  0xd2   :  { %641 = vsyncpa [#allocation5], 1 }
  0xd3   :  { %642 = vsyncpa [#allocation6], 1 }

</bundles_post_ra>
